<compile_context>
chip_gen: v7x
topology: tpu7x:2x2x1
jax: 0.10.0
libtpu: 0.0.40
codegen_flags: <defaults>
</compile_context>

<pallas_src>
from functools import partial

import jax
import jax.numpy as jnp
from jax.experimental import pallas as pl
from jax.experimental.pallas import tpu as pltpu


# --------------------------------------------------------------------------------------
# Kernel
# --------------------------------------------------------------------------------------
def _instanced_kernel(cnt_ref, we_ref, wu_ref, out_ref):
    # cnt_ref : [batch, vocab]        bf16/f32  token-count matrix (resident every step)
    # we_ref  : [vocab, G*d_model]    bf16      lane-dense reshaped W_E block for this step
    # wu_ref  : [G, d_model, vocab]   bf16      W_U block for this step's instances
    # out_ref : [batch, G, vocab]     f32       written directly in module output layout
    G, d_model, _ = wu_ref.shape

    # One fused MXU pass: h[b, g*d_model + d] = sum_v counts[b, v] * W_E[g, v, d].
    # N = G*d_model (>=128) keeps the MXU columns full and the W_E tile lane-dense.
    h = jnp.dot(cnt_ref[...], we_ref[...], preferred_element_type=jnp.float32)
    h = h.astype(jnp.bfloat16)                               # [batch, G*d_model]

    # Per-instance unembed (small static unroll; G is a compile-time constant).
    for g in range(G):
        hg = h[:, g * d_model:(g + 1) * d_model]             # [batch, d_model]
        out_ref[:, g, :] = jnp.dot(hg, wu_ref[g, :, :],
                                   preferred_element_type=jnp.float32)


# --------------------------------------------------------------------------------------
# Generation-aware block planning
# --------------------------------------------------------------------------------------
def _plan_blocks(n_inst, vocab, d_model, batch):
    """Pick the instance block size G and an explicit vmem_limit_bytes."""
    try:
        info = pltpu.get_tpu_info()
        vmem_cap = int(getattr(info, "vmem_capacity_bytes", 128 * 1024 * 1024))
    except Exception:  # pragma: no cover - conservative fallback
        vmem_cap = 128 * 1024 * 1024

    # v7x: 64 MiB VMEM per TensorCore but 2 TCs/chip -> prefer >=2 balanced parallel
    # steps so both cores stream weights.  v5e/v6e (128 MiB, single TC): fewer, larger
    # steps win (less per-step overhead, bigger DMAs).
    prefer_multi_step = vmem_cap <= 64 * 1024 * 1024
    budget = int(vmem_cap * 0.70)  # headroom for compiler scratch / pipeline state

    def block_bytes(g):
        we = vocab * g * d_model * 2          # bf16, lane-dense reshaped block
        wu = g * d_model * vocab * 2          # bf16
        out = batch * g * vocab * 4           # f32 output block
        cnt = batch * vocab * 2               # resident counts
        return 2 * (we + wu) + 2 * out + 2 * cnt   # double-buffered pipeline

    def valid(g):
        if n_inst % g:
            return False
        if g == n_inst:
            return True
        # (8,128) tiling rules: out block 2nd-last dim = g, W_E block last dim = g*d_model.
        return (g % 8 == 0) and ((g * d_model) % 128 == 0)

    cands = [g for g in range(1, n_inst + 1) if valid(g)]      # always contains n_inst
    fitting = [g for g in cands if block_bytes(g) <= budget]

    if not fitting:
        g = min(cands)  # smallest legal block; see TODO(synk) about vocab tiling
    elif prefer_multi_step:
        multi = [g for g in fitting if n_inst // g >= 2]
        g = max(multi) if multi else max(fitting)
    else:
        g = max(fitting)

    vmem_limit = int(min(vmem_cap, max(block_bytes(g) + (4 << 20), 32 << 20)))
    return g, vmem_limit


# --------------------------------------------------------------------------------------
# Wrapper
# --------------------------------------------------------------------------------------
@partial(jax.jit, static_argnames=("g_block", "vmem_limit"))
def _forward_jit(a, we_mm, wu, *, g_block, vmem_limit):
    """_forward over ALL instances: Int[batch, entry] -> Float[batch, instance, vocab]."""
    n_inst, d_model, vocab = wu.shape
    batch, entry = a.shape
    n_blocks = n_inst // g_block

    # Embedding-bag as a count matrix: counts[b, v] = #{e : a[b, e] == v}.
    # Exact in bf16 while entry <= 256; fall back to f32 otherwise.
    cnt_dtype = jnp.bfloat16 if entry <= 256 else jnp.float32
    counts = jax.nn.one_hot(a, vocab, dtype=jnp.float32).sum(axis=1).astype(cnt_dtype)

    return pl.pallas_call(
        _instanced_kernel,
        out_shape=jax.ShapeDtypeStruct((batch, n_inst, vocab), jnp.float32),
        grid_spec=pltpu.PrefetchScalarGridSpec(
            num_scalar_prefetch=0,
            grid=(n_blocks,),
            in_specs=[
                pl.BlockSpec((batch, vocab), lambda i: (0, 0)),                # counts (resident)
                pl.BlockSpec((vocab, g_block * d_model), lambda i: (0, i)),    # W_E block (lane-dense)
                pl.BlockSpec((g_block, d_model, vocab), lambda i: (i, 0, 0)),  # W_U block
            ],
            out_specs=pl.BlockSpec((batch, g_block, vocab), lambda i: (0, i, 0)),
        ),
        compiler_params=pltpu.CompilerParams(
            dimension_semantics=("parallel",),   # instance blocks are independent
            vmem_limit_bytes=vmem_limit,
        ),
    )(counts, we_mm, wu)


class InstancedEmbedUnembed:
    """JAX counterpart of the PyTorch InstancedModule (concrete embed/unembed instance)."""

    def __init__(self, n_instances, vocab, d_model, key):
        k1, k2 = jax.random.split(key)
        self.W_E = (jax.random.normal(k1, (n_instances, vocab, d_model), jnp.float32)
                    / jnp.sqrt(d_model))
        self.W_U = (jax.random.normal(k2, (n_instances, d_model, vocab), jnp.float32)
                    / jnp.sqrt(d_model))
        # bf16 copies fed to the MXU (f32 accumulation happens inside the kernel).
        self.W_E_bf16 = self.W_E.astype(jnp.bfloat16)
        self.W_U_bf16 = self.W_U.astype(jnp.bfloat16)
        # Lane-dense, fused-matmul layout: [inst, vocab, d] -> [vocab, inst*d_model].
        self.W_E_mm = jnp.transpose(self.W_E_bf16, (1, 0, 2)).reshape(
            vocab, n_instances * d_model)

    def num_instances(self):
        return self.W_E.shape[0]

    def __len__(self):
        return self.num_instances()

    def _forward(self, a):
        n_inst, d_model, vocab = self.W_U.shape
        batch, _ = a.shape
        g_block, vmem_limit = _plan_blocks(n_inst, vocab, d_model, batch)
        return _forward_jit(a, self.W_E_mm, self.W_U_bf16,
                            g_block=g_block, vmem_limit=vmem_limit)

    def forward(self, a, ibatch_size=-1):
        """Forward pass batched along instances (mirrors InstancedModule.forward).

        The kernel's instance-block grid already bounds the VMEM footprint, so
        slicing + concat per ibatch is redundant and bit-identical; everything
        routes through the single fused call.
        """
        del ibatch_size
        return self._forward(a)


# --------------------------------------------------------------------------------------
# Self-test
# --------------------------------------------------------------------------------------
if __name__ == "__main__":
    key = jax.random.PRNGKey(0)
    k_param, k_data = jax.random.split(key)

    batch, entry = 8, 4
    n_instances, vocab, d_model = 8, 128, 32

    model = InstancedEmbedUnembed(n_instances, vocab, d_model, k_param)
    a = jax.random.randint(k_data, (batch, entry), 0, vocab, dtype=jnp.int32)

    # Full instance forward (ibatch_size=-1 path).
    out = jax.block_until_ready(model.forward(a))
    assert out.shape == (batch, n_instances, vocab), out.shape

    # Instance-batched path must equal the full forward (concat along dim=1 semantics).
    out_batched = jax.block_until_ready(model.forward(a, ibatch_size=3))
    assert jnp.allclose(out, out_batched), "instance-batched forward mismatch"

    # Reference mimicking kernel numerics (bf16 weights / intermediates, f32 accumulate).
    counts = jax.nn.one_hot(a, vocab, dtype=jnp.float32).sum(axis=1)           # [batch, vocab]
    we = model.W_E_bf16.astype(jnp.float32)
    wu = model.W_U_bf16.astype(jnp.float32)
    h_ref = jnp.einsum("bv,ivd->ibd", counts, we,
                       precision=jax.lax.Precision.HIGHEST)                    # [inst, batch, d]
    h_ref = h_ref.astype(jnp.bfloat16).astype(jnp.float32)
    ref = jnp.einsum("ibd,idv->biv", h_ref, wu,
                     precision=jax.lax.Precision.HIGHEST)                      # [batch, inst, vocab]
    assert jnp.allclose(out, ref, atol=1e-2, rtol=1e-2), \
        float(jnp.max(jnp.abs(out - ref)))

    # Sanity check against the pure-f32 reference (bf16 weight cast -> relaxed tolerance).
    h32 = jnp.einsum("bv,ivd->ibd", counts, model.W_E,
                     precision=jax.lax.Precision.HIGHEST)
    ref32 = jnp.einsum("ibd,idv->biv", h32, model.W_U,
                       precision=jax.lax.Precision.HIGHEST)
    assert jnp.allclose(out, ref32, atol=5e-2, rtol=5e-2), \
        float(jnp.max(jnp.abs(out - ref32)))

    print("KERNEL_OK")
</pallas_src>

<mosaic_0001>
module attributes {stable_mosaic.version = 11 : i64} {
  func.func @_instanced_kernel(%arg0: i32, %arg1: memref<8x128xbf16, #tpu.memory_space<vmem>>, %arg2: memref<128x256xbf16, #tpu.memory_space<vmem>>, %arg3: memref<8x32x128xbf16, #tpu.memory_space<vmem>>, %arg4: memref<8x8x128xf32, #tpu.memory_space<vmem>>) attributes {dimension_semantics = [#tpu.dimension_semantics<parallel>], iteration_bounds = array<i64: 1>, scalar_prefetch = 0 : i64, scratch_operands = 0 : i64, tpu.core_type = #tpu.core_type<tc>, window_params = [{pipeline_mode = #tpu.pipeline_mode<synchronous>, transform_indices = @transform_0, window_bounds = array<i64: 8, 128>}, {transform_indices = @transform_1, window_bounds = array<i64: 128, 256>}, {transform_indices = @transform_2, window_bounds = array<i64: 8, 32, 128>}, {transform_indices = @transform_3, window_bounds = array<i64: 8, 8, 128>}]} {
    %c0 = arith.constant 0 : index
    %c0_0 = arith.constant 0 : index
    %0 = vector.load %arg1[%c0, %c0_0] : memref<8x128xbf16, #tpu.memory_space<vmem>>, vector<8x128xbf16>
    %c0_1 = arith.constant 0 : index
    %c0_2 = arith.constant 0 : index
    %1 = vector.load %arg2[%c0_1, %c0_2] : memref<128x256xbf16, #tpu.memory_space<vmem>>, vector<128x256xbf16>
    %cst = arith.constant dense<0.000000e+00> : vector<8x256xf32>
    %2 = tpu.matmul %0, %1, %cst {dimension_numbers = #tpu.dot_dimension_numbers<[1], [0], [0], [1], [0, 0, 1, 1], [], []>} : vector<8x128xbf16>, vector<128x256xbf16>, vector<8x256xf32> -> vector<8x256xf32>
    %3 = arith.truncf %2 : vector<8x256xf32> to vector<8x256xbf16>
    %4 = vector.extract_strided_slice %3 {offsets = [0, 0], sizes = [8, 32], strides = [1, 1]} : vector<8x256xbf16> to vector<8x32xbf16>
    %c0_3 = arith.constant 0 : index
    %c0_4 = arith.constant 0 : index
    %c0_5 = arith.constant 0 : index
    %5 = vector.load %arg3[%c0_3, %c0_4, %c0_5] : memref<8x32x128xbf16, #tpu.memory_space<vmem>>, vector<1x32x128xbf16>
    %6 = vector.shape_cast %5 : vector<1x32x128xbf16> to vector<32x128xbf16>
    %cst_6 = arith.constant dense<0.000000e+00> : vector<8x128xf32>
    %7 = tpu.matmul %4, %6, %cst_6 {dimension_numbers = #tpu.dot_dimension_numbers<[1], [0], [0], [1], [0, 0, 1, 1], [], []>} : vector<8x32xbf16>, vector<32x128xbf16>, vector<8x128xf32> -> vector<8x128xf32>
    %c0_7 = arith.constant 0 : index
    %c0_8 = arith.constant 0 : index
    %c0_9 = arith.constant 0 : index
    %8 = vector.load %arg4[%c0_7, %c0_8, %c0_9] : memref<8x8x128xf32, #tpu.memory_space<vmem>>, vector<8x1x128xf32>
    %9 = vector.shape_cast %8 : vector<8x1x128xf32> to vector<8x128xf32>
    %10 = vector.shape_cast %7 : vector<8x128xf32> to vector<8x1x128xf32>
    tpu.vector_store %arg4[%c0_7, %c0_8, %c0_9], %10 {strides = array<i32>} : memref<8x8x128xf32, #tpu.memory_space<vmem>>, vector<8x1x128xf32>,
    %11 = vector.extract_strided_slice %3 {offsets = [0, 32], sizes = [8, 32], strides = [1, 1]} : vector<8x256xbf16> to vector<8x32xbf16>
    %c1 = arith.constant 1 : index
    %c0_10 = arith.constant 0 : index
    %c0_11 = arith.constant 0 : index
    %12 = vector.load %arg3[%c1, %c0_10, %c0_11] : memref<8x32x128xbf16, #tpu.memory_space<vmem>>, vector<1x32x128xbf16>
    %13 = vector.shape_cast %12 : vector<1x32x128xbf16> to vector<32x128xbf16>
    %cst_12 = arith.constant dense<0.000000e+00> : vector<8x128xf32>
    %14 = tpu.matmul %11, %13, %cst_12 {dimension_numbers = #tpu.dot_dimension_numbers<[1], [0], [0], [1], [0, 0, 1, 1], [], []>} : vector<8x32xbf16>, vector<32x128xbf16>, vector<8x128xf32> -> vector<8x128xf32>
    %c0_13 = arith.constant 0 : index
    %c1_14 = arith.constant 1 : index
    %c0_15 = arith.constant 0 : index
    %15 = vector.load %arg4[%c0_13, %c1_14, %c0_15] : memref<8x8x128xf32, #tpu.memory_space<vmem>>, vector<8x1x128xf32>
    %16 = vector.shape_cast %15 : vector<8x1x128xf32> to vector<8x128xf32>
    %17 = vector.shape_cast %14 : vector<8x128xf32> to vector<8x1x128xf32>
    tpu.vector_store %arg4[%c0_13, %c1_14, %c0_15], %17 {strides = array<i32>} : memref<8x8x128xf32, #tpu.memory_space<vmem>>, vector<8x1x128xf32>,
    %18 = vector.extract_strided_slice %3 {offsets = [0, 64], sizes = [8, 32], strides = [1, 1]} : vector<8x256xbf16> to vector<8x32xbf16>
    %c2 = arith.constant 2 : index
    %c0_16 = arith.constant 0 : index
    %c0_17 = arith.constant 0 : index
    %19 = vector.load %arg3[%c2, %c0_16, %c0_17] : memref<8x32x128xbf16, #tpu.memory_space<vmem>>, vector<1x32x128xbf16>
    %20 = vector.shape_cast %19 : vector<1x32x128xbf16> to vector<32x128xbf16>
    %cst_18 = arith.constant dense<0.000000e+00> : vector<8x128xf32>
    %21 = tpu.matmul %18, %20, %cst_18 {dimension_numbers = #tpu.dot_dimension_numbers<[1], [0], [0], [1], [0, 0, 1, 1], [], []>} : vector<8x32xbf16>, vector<32x128xbf16>, vector<8x128xf32> -> vector<8x128xf32>
    %c0_19 = arith.constant 0 : index
    %c2_20 = arith.constant 2 : index
    %c0_21 = arith.constant 0 : index
    %22 = vector.load %arg4[%c0_19, %c2_20, %c0_21] : memref<8x8x128xf32, #tpu.memory_space<vmem>>, vector<8x1x128xf32>
    %23 = vector.shape_cast %22 : vector<8x1x128xf32> to vector<8x128xf32>
    %24 = vector.shape_cast %21 : vector<8x128xf32> to vector<8x1x128xf32>
    tpu.vector_store %arg4[%c0_19, %c2_20, %c0_21], %24 {strides = array<i32>} : memref<8x8x128xf32, #tpu.memory_space<vmem>>, vector<8x1x128xf32>,
    %25 = vector.extract_strided_slice %3 {offsets = [0, 96], sizes = [8, 32], strides = [1, 1]} : vector<8x256xbf16> to vector<8x32xbf16>
    %c3 = arith.constant 3 : index
    %c0_22 = arith.constant 0 : index
    %c0_23 = arith.constant 0 : index
    %26 = vector.load %arg3[%c3, %c0_22, %c0_23] : memref<8x32x128xbf16, #tpu.memory_space<vmem>>, vector<1x32x128xbf16>
    %27 = vector.shape_cast %26 : vector<1x32x128xbf16> to vector<32x128xbf16>
    %cst_24 = arith.constant dense<0.000000e+00> : vector<8x128xf32>
    %28 = tpu.matmul %25, %27, %cst_24 {dimension_numbers = #tpu.dot_dimension_numbers<[1], [0], [0], [1], [0, 0, 1, 1], [], []>} : vector<8x32xbf16>, vector<32x128xbf16>, vector<8x128xf32> -> vector<8x128xf32>
    %c0_25 = arith.constant 0 : index
    %c3_26 = arith.constant 3 : index
    %c0_27 = arith.constant 0 : index
    %29 = vector.load %arg4[%c0_25, %c3_26, %c0_27] : memref<8x8x128xf32, #tpu.memory_space<vmem>>, vector<8x1x128xf32>
    %30 = vector.shape_cast %29 : vector<8x1x128xf32> to vector<8x128xf32>
    %31 = vector.shape_cast %28 : vector<8x128xf32> to vector<8x1x128xf32>
    tpu.vector_store %arg4[%c0_25, %c3_26, %c0_27], %31 {strides = array<i32>} : memref<8x8x128xf32, #tpu.memory_space<vmem>>, vector<8x1x128xf32>,
    %32 = vector.extract_strided_slice %3 {offsets = [0, 128], sizes = [8, 32], strides = [1, 1]} : vector<8x256xbf16> to vector<8x32xbf16>
    %c4 = arith.constant 4 : index
    %c0_28 = arith.constant 0 : index
    %c0_29 = arith.constant 0 : index
    %33 = vector.load %arg3[%c4, %c0_28, %c0_29] : memref<8x32x128xbf16, #tpu.memory_space<vmem>>, vector<1x32x128xbf16>
    %34 = vector.shape_cast %33 : vector<1x32x128xbf16> to vector<32x128xbf16>
    %cst_30 = arith.constant dense<0.000000e+00> : vector<8x128xf32>
    %35 = tpu.matmul %32, %34, %cst_30 {dimension_numbers = #tpu.dot_dimension_numbers<[1], [0], [0], [1], [0, 0, 1, 1], [], []>} : vector<8x32xbf16>, vector<32x128xbf16>, vector<8x128xf32> -> vector<8x128xf32>
    %c0_31 = arith.constant 0 : index
    %c4_32 = arith.constant 4 : index
    %c0_33 = arith.constant 0 : index
    %36 = vector.load %arg4[%c0_31, %c4_32, %c0_33] : memref<8x8x128xf32, #tpu.memory_space<vmem>>, vector<8x1x128xf32>
    %37 = vector.shape_cast %36 : vector<8x1x128xf32> to vector<8x128xf32>
    %38 = vector.shape_cast %35 : vector<8x128xf32> to vector<8x1x128xf32>
    tpu.vector_store %arg4[%c0_31, %c4_32, %c0_33], %38 {strides = array<i32>} : memref<8x8x128xf32, #tpu.memory_space<vmem>>, vector<8x1x128xf32>,
    %39 = vector.extract_strided_slice %3 {offsets = [0, 160], sizes = [8, 32], strides = [1, 1]} : vector<8x256xbf16> to vector<8x32xbf16>
    %c5 = arith.constant 5 : index
    %c0_34 = arith.constant 0 : index
    %c0_35 = arith.constant 0 : index
    %40 = vector.load %arg3[%c5, %c0_34, %c0_35] : memref<8x32x128xbf16, #tpu.memory_space<vmem>>, vector<1x32x128xbf16>
    %41 = vector.shape_cast %40 : vector<1x32x128xbf16> to vector<32x128xbf16>
    %cst_36 = arith.constant dense<0.000000e+00> : vector<8x128xf32>
    %42 = tpu.matmul %39, %41, %cst_36 {dimension_numbers = #tpu.dot_dimension_numbers<[1], [0], [0], [1], [0, 0, 1, 1], [], []>} : vector<8x32xbf16>, vector<32x128xbf16>, vector<8x128xf32> -> vector<8x128xf32>
    %c0_37 = arith.constant 0 : index
    %c5_38 = arith.constant 5 : index
    %c0_39 = arith.constant 0 : index
    %43 = vector.load %arg4[%c0_37, %c5_38, %c0_39] : memref<8x8x128xf32, #tpu.memory_space<vmem>>, vector<8x1x128xf32>
    %44 = vector.shape_cast %43 : vector<8x1x128xf32> to vector<8x128xf32>
    %45 = vector.shape_cast %42 : vector<8x128xf32> to vector<8x1x128xf32>
    tpu.vector_store %arg4[%c0_37, %c5_38, %c0_39], %45 {strides = array<i32>} : memref<8x8x128xf32, #tpu.memory_space<vmem>>, vector<8x1x128xf32>,
    %46 = vector.extract_strided_slice %3 {offsets = [0, 192], sizes = [8, 32], strides = [1, 1]} : vector<8x256xbf16> to vector<8x32xbf16>
    %c6 = arith.constant 6 : index
    %c0_40 = arith.constant 0 : index
    %c0_41 = arith.constant 0 : index
    %47 = vector.load %arg3[%c6, %c0_40, %c0_41] : memref<8x32x128xbf16, #tpu.memory_space<vmem>>, vector<1x32x128xbf16>
    %48 = vector.shape_cast %47 : vector<1x32x128xbf16> to vector<32x128xbf16>
    %cst_42 = arith.constant dense<0.000000e+00> : vector<8x128xf32>
    %49 = tpu.matmul %46, %48, %cst_42 {dimension_numbers = #tpu.dot_dimension_numbers<[1], [0], [0], [1], [0, 0, 1, 1], [], []>} : vector<8x32xbf16>, vector<32x128xbf16>, vector<8x128xf32> -> vector<8x128xf32>
    %c0_43 = arith.constant 0 : index
    %c6_44 = arith.constant 6 : index
    %c0_45 = arith.constant 0 : index
    %50 = vector.load %arg4[%c0_43, %c6_44, %c0_45] : memref<8x8x128xf32, #tpu.memory_space<vmem>>, vector<8x1x128xf32>
    %51 = vector.shape_cast %50 : vector<8x1x128xf32> to vector<8x128xf32>
    %52 = vector.shape_cast %49 : vector<8x128xf32> to vector<8x1x128xf32>
    tpu.vector_store %arg4[%c0_43, %c6_44, %c0_45], %52 {strides = array<i32>} : memref<8x8x128xf32, #tpu.memory_space<vmem>>, vector<8x1x128xf32>,
    %53 = vector.extract_strided_slice %3 {offsets = [0, 224], sizes = [8, 32], strides = [1, 1]} : vector<8x256xbf16> to vector<8x32xbf16>
    %c7 = arith.constant 7 : index
    %c0_46 = arith.constant 0 : index
    %c0_47 = arith.constant 0 : index
    %54 = vector.load %arg3[%c7, %c0_46, %c0_47] : memref<8x32x128xbf16, #tpu.memory_space<vmem>>, vector<1x32x128xbf16>
    %55 = vector.shape_cast %54 : vector<1x32x128xbf16> to vector<32x128xbf16>
    %cst_48 = arith.constant dense<0.000000e+00> : vector<8x128xf32>
    %56 = tpu.matmul %53, %55, %cst_48 {dimension_numbers = #tpu.dot_dimension_numbers<[1], [0], [0], [1], [0, 0, 1, 1], [], []>} : vector<8x32xbf16>, vector<32x128xbf16>, vector<8x128xf32> -> vector<8x128xf32>
    %c0_49 = arith.constant 0 : index
    %c7_50 = arith.constant 7 : index
    %c0_51 = arith.constant 0 : index
    %57 = vector.load %arg4[%c0_49, %c7_50, %c0_51] : memref<8x8x128xf32, #tpu.memory_space<vmem>>, vector<8x1x128xf32>
    %58 = vector.shape_cast %57 : vector<8x1x128xf32> to vector<8x128xf32>
    %59 = vector.shape_cast %56 : vector<8x128xf32> to vector<8x1x128xf32>
    tpu.vector_store %arg4[%c0_49, %c7_50, %c0_51], %59 {strides = array<i32>} : memref<8x8x128xf32, #tpu.memory_space<vmem>>, vector<8x1x128xf32>,
    return
  }
  func.func @transform_0(%arg0: i32) -> (i32, i32) {
    %c0_i32 = arith.constant 0 : i32
    %c0_i32_0 = arith.constant 0 : i32
    %c0_i32_1 = arith.constant 0 : i32
    return %c0_i32, %c0_i32_0 : i32, i32
  }
  func.func @transform_1(%arg0: i32) -> (i32, i32) {
    %c0_i32 = arith.constant 0 : i32
    %c0_i32_0 = arith.constant 0 : i32
    return %c0_i32, %arg0 : i32, i32
  }
  func.func @transform_2(%arg0: i32) -> (i32, i32, i32) {
    %c0_i32 = arith.constant 0 : i32
    %c0_i32_0 = arith.constant 0 : i32
    %c0_i32_1 = arith.constant 0 : i32
    return %arg0, %c0_i32, %c0_i32_0 : i32, i32, i32
  }
  func.func @transform_3(%arg0: i32) -> (i32, i32, i32) {
    %c0_i32 = arith.constant 0 : i32
    %c0_i32_0 = arith.constant 0 : i32
    %c0_i32_1 = arith.constant 0 : i32
    return %c0_i32, %arg0, %c0_i32_0 : i32, i32, i32
  }
}

</mosaic_0001>

<bundles_post_ra>
// kernel: _forward_jit.1
= control target key start
LH: loop header
LB: loop body
LE: loop exit
PB: predicated region body
PF: predicated region fallthrough
CT: control target
= control target key end

     0   :  { %8 = vsyncpa [#allocation3], 0  ;;  %s1681_s0 = inlined_call_operand.vmem [shape: bf16[8,128], index: 0, kind: input, shape index: {}]   ;;  %s1682_s1 = inlined_call_operand.hbm [shape: bf16[128,256], index: 1, kind: input, shape index: {}]   ;;  %s1683_s2 = inlined_call_operand.hbm [shape: bf16[8,32,128], index: 2, kind: input, shape index: {}]   ;;  %s1684_s3 = inlined_call_operand.hbm [shape: f32[8,8,128], index: 3, kind: output, shape index: {}]  }
   0x1   :  { %9 = vsyncpa [#allocation6], 0 }
   0x2   :  { %10 = vsyncpa [#allocation4], 0  ;;  %s1509_s12 = smov [#allocation2]   ;;  %s1437_s16 = scalar_lea.hbm %s1682_s1, 2048 }
   0x3   :  { %s18_s13 = sshll.u32 %s1509_s12, 4  ;;  %p1438_p0 = scmp.ne.s32.totalorder %s1682_s1, %s1437_s16  ;;  %s19_s13 = int_to_ptr.vmem [resolvable:$true] %s18_s13 }
   0x4   :  { %p1441_p1 = scmp.lt.u32.totalorder %s1437_s16, %s1682_s1 }
   0x6   :  { %p1443_p2 = pnand %p1441_p1, %p1438_p0 }
   0x8   :  { %1446 = shalt.err (!%p1443_p2)
}
   0x9   :  { %s1447_s21 = scalar_lea.vmem %s19_s13, 2048  ;;  %p1452_p4 = scmp.lt.s32.totalorder %s19_s13, %s19_s13 }
   0xa   :  { %p1448_p3 = scmp.ne.s32.totalorder %s19_s13, %s1447_s21  ;;  %p1453_p5 = scmp.lt.s32.totalorder %s1447_s21, %s1447_s21 }
   0xc   :  { %p1454_p6 = por %p1453_p5, %p1452_p4 }
   0xe   :  { %p1455_p7 = pnand %p1454_p6, %p1448_p3 }
  0x10   :  { %1458 = shalt.err (!%p1455_p7)
}
  0x11   :  { %s1510_s22 = smov 128   ;;  %s1511_s23 = smov 8  }
  0x12   :  { %24 = dma.hbm_to_vmem [thread:$0]  %s1682_s1, 2048, %s19_s13, [#allocation3], %s1510_s22, %s1510_s22, %s1511_s23  }
  0x13   :  { %s1512_s26 = smov [#allocation5]   ;;  %s1459_s30 = scalar_lea.hbm %s1683_s2, 2048 }
  0x14   :  { %s30_s27 = sshll.u32 %s1512_s26, 4  ;;  %p1460_p8 = scmp.ne.s32.totalorder %s1683_s2, %s1459_s30  ;;  %s31_s27 = int_to_ptr.vmem [resolvable:$true] %s30_s27 }
  0x15   :  { %p1463_p9 = scmp.lt.u32.totalorder %s1459_s30, %s1683_s2 }
  0x17   :  { %p1465_p10 = pnand %p1463_p9, %p1460_p8 }
  0x19   :  { %1468 = shalt.err (!%p1465_p10)
}
  0x1a   :  { %s1469_s8 = scalar_lea.vmem %s31_s27, 2048  ;;  %p1474_p12 = scmp.lt.s32.totalorder %s31_s27, %s31_s27 }
  0x1b   :  { %p1470_p11 = scmp.ne.s32.totalorder %s31_s27, %s1469_s8  ;;  %p1475_p13 = scmp.lt.s32.totalorder %s1469_s8, %s1469_s8 }
  0x1d   :  { %p1476_p0 = por %p1475_p13, %p1474_p12 }
  0x1f   :  { %p1477_p1 = pnand %p1476_p0, %p1470_p11 }
  0x21   :  { %1480 = shalt.err (!%p1477_p1)
}
  0x22   :  { %s1513_s1 = smov 64   ;;  %s1514_s9 = smov 4  }
  0x23   :  { %36 = dma.hbm_to_vmem [thread:$0]  %s1683_s2, 2048, %s31_s27, [#allocation6], %s1513_s1, %s1513_s1, %s1514_s9  }
  0x24   :  { %1503 = dma.done.wait [#allocation3], 2048  }
  0x25   :  { %1504 = vsyncadd [#allocation3], 4294965248 }
  0x26   :  { %1505 = dma.done.wait [#allocation6], 2048  }
  0x27   :  { %1506 = vsyncadd [#allocation6], 4294965248  ;;  %v1515_v0 = vmov 0   ;;  %v1516_v1 = vmov 0.0   ;;  %v1397_v2 = vld [vmem:[#allocation2 + $0x4] ss:$8 sps:$4 sm:$0xff]   ;;  %v249_v49 = vlaneseq }
  0x28   :  { %173 = vmatprep.mubr.bf16.mxu0 %v1515_v0  ;;  %1320 = vmatprep.subr.bf16.mxu1 %v1516_v1  ;;  %v1399_v3 = vld [vmem:[#allocation2] ss:$8 sps:$4 sm:$0xff]   ;;  %v1400_v4 = vld [vmem:[#allocation2 + $0x14] ss:$8 sps:$4 sm:$0xff]   ;;  %v1402_v5 = vld [vmem:[#allocation2 + $0x10] ss:$8 sps:$4 sm:$0xff]  }
  0x29   :  { %141 = vmatprep.subr.bf16.mxu0 %v1397_v2  ;;  %v1403_v6 = vld [vmem:[#allocation2 + $0x24] ss:$8 sps:$4 sm:$0xff]   ;;  %v1405_v7 = vld [vmem:[#allocation2 + $0x20] ss:$8 sps:$4 sm:$0xff]   ;;  %v1406_v8 = vld [vmem:[#allocation2 + $0x34] ss:$8 sps:$4 sm:$0xff]  }
  0x2a   :  { %142 = vmatpush1.bf16.msra.mxu0 %v1399_v3  ;;  %v1408_v9 = vld [vmem:[#allocation2 + $0x30] ss:$8 sps:$4 sm:$0xff]   ;;  %v1421_v10 = vld [vmem:[#allocation5] sm:$0xff]   ;;  %v1412_v13 = vld [vmem:[#allocation2 + $0x54] ss:$8 sps:$4 sm:$0xff]   ;;  %vm1517_vm0 = vmmov 0  }
  0x2b   :  { %143 = vmatprep.subr.bf16.mxu0 %v1400_v4  ;;  %v1409_v11 = vld [vmem:[#allocation2 + $0x44] ss:$8 sps:$4 sm:$0xff]   ;;  %v1411_v12 = vld [vmem:[#allocation2 + $0x40] ss:$8 sps:$4 sm:$0xff]   ;;  %1321 = vmatpush3.bf16.msra.mxu1 %v1421_v10  ;;  %v1414_v14 = vld [vmem:[#allocation2 + $0x50] ss:$8 sps:$4 sm:$0xff]  }
  0x2c   :  { %1322 = vmatprep.subr.bf16.mxu1 %v1516_v1  ;;  %v1415_v15 = vld [vmem:[#allocation2 + $0x64] ss:$8 sps:$4 sm:$0xff]   ;;  %v1417_v16 = vld [vmem:[#allocation2 + $0x60] ss:$8 sps:$4 sm:$0xff]   ;;  %v1418_v17 = vld [vmem:[#allocation2 + $0x74] ss:$8 sps:$4 sm:$0xff]   ;;  %1324 = vmatprep.mubr.msk.bf16.mxu1 %vm1517_vm0, %v1516_v1 }
  0x2d   :  { %v1420_v18 = vld [vmem:[#allocation2 + $0x70] ss:$8 sps:$4 sm:$0xff]   ;;  %v1422_v20 = vld [vmem:[#allocation5 + $0x40] sm:$0xff]   ;;  %v1423_v21 = vld [vmem:[#allocation5 + $0x8] sm:$0xff]   ;;  %vm200_vm1 = vcmask 261120   ;;  %s1519_s13 = smov 96  }
  0x2e   :  { %144 = vmatpush1.bf16.msra.mxu0 %v1402_v5  ;;  %v44_v19 = vld [vmem:[%s1681_s0] sm:$0xf]  ;;  %v1424_v22 = vld [vmem:[#allocation5 + $0x48] sm:$0xff]   ;;  %v1425_v26 = vld [vmem:[#allocation5 + $0x10] sm:$0xff]   ;;  %s1518_s0 = smov 32   ;;  %v250_v51 = vshrl.u32 %v249_v49, 7 }
  0x2f   :  { %145 = vmatprep.subr.bf16.mxu0 %v1403_v6  ;;  %1323 = vmatpush3.bf16.msra.mxu1 %v1423_v21  ;;  %v1428_v29 = vld [vmem:[#allocation5 + $0x60] sm:$0xff]   ;;  %v1426_v31 = vld [vmem:[#allocation5 + $0x18] sm:$0xff]   ;;  %v1430_v32 = vld [vmem:[#allocation5 + $0x68] sm:$0xff]   ;;  %v1520_v47 = vmov 1966171168   ;;  %s1521_s14 = smov [#allocation7]  }
  0x30   :  { %1328 = vmatprep.subr.bf16.mxu1 %v1516_v1  ;;  %v1427_v33 = vld [vmem:[#allocation5 + $0x20] sm:$0xff]   ;;  %v1429_v35 = vld [vmem:[#allocation5 + $0x28] sm:$0xff]   ;;  %v1431_v37 = vld [vmem:[#allocation5 + $0x30] sm:$0xff]   ;;  %v247_v48 = vunpack.c.l.s4 %v1520_v47  ;;  %s1211_s15 = sshll.u32 %s1521_s14, 4  ;;  %s1212_s15 = int_to_ptr.vmem [resolvable:$true] %s1211_s15 }
  0x31   :  { %v1432_v39 = vld [vmem:[#allocation5 + $0x38] sm:$0xff]   ;;  %v1433_v40 = vld [vmem:[#allocation5 + $0x50] sm:$0xff]   ;;  %s1481_s16 = scalar_lea.vmem %s1212_s15, 1024  ;;  %p1486_p3 = scmp.lt.s32.totalorder %s1212_s15, %s1212_s15 }
  0x32   :  { %146 = vmatpush1.bf16.msra.mxu0 %v1405_v7  ;;  %v1434_v42 = vld [vmem:[#allocation5 + $0x58] sm:$0xff]   ;;  %v1435_v43 = vld [vmem:[#allocation5 + $0x70] sm:$0xff]   ;;  %v248_v50 = vunpack.c.0.s8 %v247_v48  ;;  %p1482_p2 = scmp.ne.s32.totalorder %s1212_s15, %s1481_s16  ;;  %p1487_p4 = scmp.lt.s32.totalorder %s1481_s16, %s1481_s16 }
  0x33   :  { %147 = vmatprep.subr.bf16.mxu0 %v1406_v8  ;;  %v1436_v45 = vld [vmem:[#allocation5 + $0x78] sm:$0xff]  }
  0x34   :  { %v1616_v52 = vsub.s32 %v248_v50, %v250_v51  ;;  %p1488_p5 = por %p1487_p4, %p1486_p3 }
  0x36   :  { %148 = vmatpush1.bf16.msra.mxu0 %v1408_v9  ;;  %p1489_p6 = pnand %p1488_p5, %p1482_p2 }
  0x37   :  { %149 = vmatprep.subr.bf16.mxu0 %v1409_v11 }
  0x3a   :  { %150 = vmatpush1.bf16.msra.mxu0 %v1411_v12 }
  0x3b   :  { %151 = vmatprep.subr.bf16.mxu0 %v1412_v13 }
  0x3e   :  { %152 = vmatpush1.bf16.msra.mxu0 %v1414_v14 }
  0x3f   :  { %153 = vmatprep.subr.bf16.mxu0 %v1415_v15 }
  0x42   :  { %154 = vmatpush1.bf16.msra.mxu0 %v1417_v16 }
  0x43   :  { %155 = vmatprep.subr.bf16.mxu0 %v1418_v17 }
  0x46   :  { %156 = vmatpush1.bf16.msra.mxu0 %v1420_v18 }
  0x47   :  { %1352 = vmatprep.subr.bf16.mxu0 %v1516_v1 }
  0x49   :  { %174 = vmatmul.mubr.bf16.vlgmr.msra.gmra.mrb[0].mxu0 %v44_v19 }
  0x4a   :  { %1353 = vmatpush3.bf16.msra.mxu0 %v1422_v20  ;;  %1356 = vmatprep.mubr.msk.bf16.mxu0 %vm1517_vm0, %v1516_v1 }
  0x4b   :  { %1354 = vmatprep.subr.bf16.mxu0 %v1516_v1 }
  0x4e   :  { %1355 = vmatpush3.bf16.msra.mxu0 %v1424_v22 }
  0x4f   :  { %1368 = vmatprep.subr.bf16.mxu0 %v1516_v1 }
 0x11c   :  { %v175_v23 = vpop.f32.mrb[0].mxu0 }
 0x11d   :  { %v182_v24 = vpack.c.bf16 %v175_v23, %v175_v23  ;;  %v177_v25 = vpop.f32.mrb[1].mxu0 }
 0x11e   :  { %v183_v27 = vpack.c.bf16 %v177_v25, %v177_v25  ;;  %v179_v28 = vpop.f32.mrb[2].mxu0 }
 0x11f   :  { %572 = vrot.lane.b32.xlu1 %v182_v24, %s1518_s0  ;;  %316 = vrot.lane.b32.xlu0 %v182_v24, %s1519_s13  ;;  %v180_v30 = vpop.f32.mrb[3].mxu0 }
 0x120   :  { %1325 = vmatmul.mubr.msk.bf16.vlgmr.msra.gmra.mrb[0].mxu1 %vm200_vm1, %v182_v24  ;;  %1357 = vmatmul.mubr.msk.bf16.vlgmr.msra.gmra.mrb[4].mxu0 %vm200_vm1, %v183_v27 }
 0x121   :  { %1329 = vmatpush3.bf16.msra.mxu1 %v1425_v26  ;;  %1332 = vmatprep.mubr.msk.bf16.mxu1 %vm1517_vm0, %v1516_v1 }
 0x122   :  { %1330 = vmatprep.subr.bf16.mxu1 %v1516_v1  ;;  %1369 = vmatpush3.bf16.msra.mxu0 %v1428_v29 }
 0x123   :  { %444 = vrot.lane.b32.xlu0 %v182_v24, %s1513_s1  ;;  %827 = vrot.lane.b32.xlu1 %v183_v27, %s1519_s13 }
 0x124   :  { %1370 = vmatprep.subr.bf16.mxu0 %v1516_v1  ;;  %1372 = vmatprep.mubr.msk.bf16.mxu0 %vm1517_vm0, %v1516_v1 }
 0x125   :  { %1331 = vmatpush3.bf16.msra.mxu1 %v1426_v31 }
 0x126   :  { %1336 = vmatprep.subr.bf16.mxu1 %v1516_v1  ;;  %1371 = vmatpush3.bf16.msra.mxu0 %v1430_v32 }
 0x127   :  { %955 = vrot.lane.b32.xlu0 %v183_v27, %s1513_s1  ;;  %1083 = vrot.lane.b32.xlu1 %v183_v27, %s1518_s0 }
 0x191   :  { %v317_v34 = vpop.permute.xlu0 %316  ;;  %v573_v41 = vpop.permute.xlu1 %572 }
 0x192   :  { %1333 = vmatmul.mubr.msk.bf16.vlgmr.msra.gmra.mrb[4].mxu1 %vm200_vm1, %v317_v34 }
 0x193   :  { %1337 = vmatpush3.bf16.msra.mxu1 %v1427_v33  ;;  %1340 = vmatprep.mubr.msk.bf16.mxu1 %vm1517_vm0, %v1516_v1 }
 0x194   :  { %1338 = vmatprep.subr.bf16.mxu1 %v1516_v1 }
 0x195   :  { %v445_v36 = vpop.permute.xlu0 %444  ;;  %v828_v44 = vpop.permute.xlu1 %827 }
 0x197   :  { %1339 = vmatpush3.bf16.msra.mxu1 %v1429_v35 }
 0x198   :  { %1344 = vmatprep.subr.bf16.mxu1 %v1516_v1 }
 0x199   :  { %v956_v38 = vpop.permute.xlu0 %955  ;;  %v1084_v46 = vpop.permute.xlu1 %1083 }
 0x19a   :  { %1341 = vmatmul.mubr.msk.bf16.vlgmr.msra.gmra.mrb[8].mxu1 %vm200_vm1, %v445_v36  ;;  %1373 = vmatmul.mubr.msk.bf16.vlgmr.msra.gmra.mrb[8].mxu0 %vm200_vm1, %v956_v38 }
 0x19b   :  { %1345 = vmatpush3.bf16.msra.mxu1 %v1431_v37  ;;  %1348 = vmatprep.mubr.msk.bf16.mxu1 %vm1517_vm0, %v1516_v1 }
 0x19c   :  { %1346 = vmatprep.subr.bf16.mxu1 %v1516_v1 }
 0x19f   :  { %1347 = vmatpush3.bf16.msra.mxu1 %v1432_v39 }
 0x1a0   :  { %1360 = vmatprep.subr.bf16.mxu1 %v1516_v1 }
 0x1a2   :  { %1349 = vmatmul.mubr.msk.bf16.vlgmr.msra.gmra.mrb[12].mxu1 %vm200_vm1, %v573_v41 }
 0x1a3   :  { %1361 = vmatpush3.bf16.msra.mxu1 %v1433_v40  ;;  %1364 = vmatprep.mubr.msk.bf16.mxu1 %vm1517_vm0, %v1516_v1 }
 0x1a4   :  { %1362 = vmatprep.subr.bf16.mxu1 %v1516_v1 }
 0x1a7   :  { %1363 = vmatpush3.bf16.msra.mxu1 %v1434_v42 }
 0x1a8   :  { %1376 = vmatprep.subr.bf16.mxu1 %v1516_v1 }
 0x1aa   :  { %1365 = vmatmul.mubr.msk.bf16.vlgmr.msra.gmra.mrb[16].mxu1 %vm200_vm1, %v828_v44 }
 0x1ab   :  { %1377 = vmatpush3.bf16.msra.mxu1 %v1435_v43  ;;  %1380 = vmatprep.mubr.msk.bf16.mxu1 %vm1517_vm0, %v1516_v1 }
 0x1ac   :  { %1378 = vmatprep.subr.bf16.mxu1 %v1516_v1 }
 0x1af   :  { %1379 = vmatpush3.bf16.msra.mxu1 %v1436_v45 }
 0x1b2   :  { %1381 = vmatmul.mubr.msk.bf16.vlgmr.msra.gmra.mrb[20].mxu1 %vm200_vm1, %v1084_v46 }
 0x1f3   :  { %v238_v53 = vpop.f32.mrb[0].mxu1  ;;  %v749_v54 = vpop.f32.mrb[4].mxu0 }
 0x1f4   :  { %v245_v55 = vcombine.high %v238_v53, %v238_v53  ;;  %v252_v56 = vrot.slane %v238_v53, %v1616_v52  ;;  %v1326_v57 = vpop.f32.mrb[1].mxu1  ;;  %v756_v58 = vcombine.high %v749_v54, %v749_v54  ;;  %v763_v59 = vrot.slane %v749_v54, %v1616_v52  ;;  %v1358_v60 = vpop.f32.mrb[5].mxu0 }
 0x1f5   :  { %v241_v61 = vpop.f32.mrb[2].mxu1  ;;  %v752_v62 = vpop.f32.mrb[6].mxu0 }
 0x1f6   :  { %v259_v63 = vrot.slane %v245_v55, %v1616_v52  ;;  %v260_v0 = vcombine.high %v252_v56, %v252_v56  ;;  %v268_v1 = vrot.slane %v252_v56, %v1616_v52  ;;  %1243 = vst.sshfl [vmem:[#allocation7] sm:$0x1 pattern:$0x73625140] %v252_v56  ;;  %v770_v2 = vrot.slane %v756_v58, %v1616_v52  ;;  %v1327_v3 = vpop.f32.mrb[3].mxu1  ;;  %v1359_v4 = vpop.f32.mrb[7].mxu0 }
 0x1f7   :  { %1271 = vst.sshfl [vmem:[#allocation7 + $0x4] sm:$0x1 pattern:$0x73625140] %v763_v59  ;;  %v771_v5 = vcombine.high %v763_v59, %v763_v59  ;;  %v779_v6 = vrot.slane %v763_v59, %v1616_v52 }
 0x1f8   :  { %v261_v7 = vcombine.high %v259_v63, %v259_v63  ;;  %v275_v8 = vrot.slane %v259_v63, %v1616_v52  ;;  %v282_v9 = vrot.slane %v260_v0, %v1616_v52  ;;  %v290_v10 = vcombine.high %v268_v1, %v268_v1  ;;  %1244 = vst.sshfl [vmem:[#allocation7 + $0x8] sm:$0x1 pattern:$0x73625140] %v260_v0 }
 0x1f9   :  { %1245 = vst.sshfl [vmem:[#allocation7 + $0x20] sm:$0x1 pattern:$0x73625140] %v259_v63  ;;  %v772_v11 = vcombine.high %v770_v2, %v770_v2  ;;  %v786_v12 = vrot.slane %v770_v2, %v1616_v52  ;;  %v793_v13 = vrot.slane %v771_v5, %v1616_v52  ;;  %v801_v14 = vcombine.high %v779_v6, %v779_v6 }
 0x1fa   :  { %1273 = vst.sshfl [vmem:[#allocation7 + $0x24] sm:$0x1 pattern:$0x73625140] %v770_v2  ;;  %v289_v15 = vrot.slane %v261_v7, %v1616_v52  ;;  %v291_v16 = vcombine.high %v275_v8, %v275_v8  ;;  %v292_v17 = vcombine.high %v282_v9, %v282_v9  ;;  %304 = vst [vmem:[#allocation7 + $0x10] sm:$0x1] %v290_v10 }
 0x1fb   :  { %1272 = vst.sshfl [vmem:[#allocation7 + $0xc] sm:$0x1 pattern:$0x73625140] %v771_v5  ;;  %v800_v18 = vrot.slane %v772_v11, %v1616_v52  ;;  %v802_v19 = vcombine.high %v786_v12, %v786_v12  ;;  %v803_v20 = vcombine.high %v793_v13, %v793_v13  ;;  %815 = vst [vmem:[#allocation7 + $0x14] sm:$0x1] %v801_v14 }
 0x1fc   :  { %1246 = vst.sshfl [vmem:[#allocation7 + $0x28] sm:$0x1 pattern:$0x73625140] %v261_v7  ;;  %v293_v21 = vcombine.high %v289_v15, %v289_v15  ;;  %305 = vst [vmem:[#allocation7 + $0x18] sm:$0x1] %v292_v17 }
 0x1fd   :  { %1274 = vst.sshfl [vmem:[#allocation7 + $0x2c] sm:$0x1 pattern:$0x73625140] %v772_v11  ;;  %308 = vst [vmem:[#allocation7 + $0x30] sm:$0x1] %v291_v16  ;;  %v804_v22 = vcombine.high %v800_v18, %v800_v18 }
 0x1fe   :  { %816 = vst [vmem:[#allocation7 + $0x1c] sm:$0x1] %v803_v20  ;;  %819 = vst [vmem:[#allocation7 + $0x34] sm:$0x1] %v802_v19 }
 0x1ff   :  { %309 = vst [vmem:[#allocation7 + $0x38] sm:$0x1] %v293_v21  ;;  %820 = vst [vmem:[#allocation7 + $0x3c] sm:$0x1] %v804_v22 }
 0x265   :  { %v367_v23 = vpop.f32.mrb[4].mxu1 }
 0x266   :  { %v374_v24 = vcombine.high %v367_v23, %v367_v23  ;;  %v381_v25 = vrot.slane %v367_v23, %v1616_v52  ;;  %v1334_v26 = vpop.f32.mrb[5].mxu1 }
 0x267   :  { %v370_v27 = vpop.f32.mrb[6].mxu1 }
 0x268   :  { %v388_v28 = vrot.slane %v374_v24, %v1616_v52  ;;  %v389_v29 = vcombine.high %v381_v25, %v381_v25  ;;  %v397_v30 = vrot.slane %v381_v25, %v1616_v52  ;;  %1250 = vst.sshfl [vmem:[#allocation7 + $0x1] sm:$0x1 pattern:$0x73625140] %v381_v25  ;;  %v1335_v31 = vpop.f32.mrb[7].mxu1 }
 0x26a   :  { %v390_v32 = vcombine.high %v388_v28, %v388_v28  ;;  %v404_v33 = vrot.slane %v388_v28, %v1616_v52  ;;  %v411_v34 = vrot.slane %v389_v29, %v1616_v52  ;;  %v419_v35 = vcombine.high %v397_v30, %v397_v30  ;;  %1251 = vst.sshfl [vmem:[#allocation7 + $0x9] sm:$0x1 pattern:$0x73625140] %v389_v29 }
 0x26b   :  { %1252 = vst.sshfl [vmem:[#allocation7 + $0x21] sm:$0x1 pattern:$0x73625140] %v388_v28 }
 0x26c   :  { %v418_v36 = vrot.slane %v390_v32, %v1616_v52  ;;  %v420_v37 = vcombine.high %v404_v33, %v404_v33  ;;  %v421_v38 = vcombine.high %v411_v34, %v411_v34  ;;  %433 = vst [vmem:[#allocation7 + $0x11] sm:$0x1] %v419_v35  ;;  %1253 = vst.sshfl [vmem:[#allocation7 + $0x29] sm:$0x1 pattern:$0x73625140] %v390_v32 }
 0x26d   :  { %v495_v39 = vpop.f32.mrb[8].mxu1  ;;  %v1006_v40 = vpop.f32.mrb[8].mxu0 }
 0x26e   :  { %v422_v41 = vcombine.high %v418_v36, %v418_v36  ;;  %434 = vst [vmem:[#allocation7 + $0x19] sm:$0x1] %v421_v38  ;;  %437 = vst [vmem:[#allocation7 + $0x31] sm:$0x1] %v420_v37  ;;  %v502_v42 = vcombine.high %v495_v39, %v495_v39  ;;  %v509_v43 = vrot.slane %v495_v39, %v1616_v52  ;;  %v1342_v45 = vpop.f32.mrb[9].mxu1  ;;  %v1374_v46 = vpop.f32.mrb[9].mxu0 }
 0x26f   :  { %v1013_v44 = vcombine.high %v1006_v40, %v1006_v40  ;;  %v1020_v47 = vrot.slane %v1006_v40, %v1616_v52  ;;  %v498_v48 = vpop.f32.mrb[10].mxu1  ;;  %v1009_v49 = vpop.f32.mrb[10].mxu0 }
 0x270   :  { %438 = vst [vmem:[#allocation7 + $0x39] sm:$0x1] %v422_v41  ;;  %v516_v50 = vrot.slane %v502_v42, %v1616_v52  ;;  %v517_v51 = vcombine.high %v509_v43, %v509_v43  ;;  %v525_v53 = vrot.slane %v509_v43, %v1616_v52  ;;  %1257 = vst.sshfl [vmem:[#allocation7 + $0x2] sm:$0x1 pattern:$0x73625140] %v509_v43 }
 0x271   :  { %v1027_v54 = vrot.slane %v1013_v44, %v1616_v52  ;;  %v1343_v55 = vpop.f32.mrb[11].mxu1  ;;  %v1375_v56 = vpop.f32.mrb[11].mxu0  ;;  %v1028_v57 = vcombine.high %v1020_v47, %v1020_v47  ;;  %v1036_v58 = vrot.slane %v1020_v47, %v1616_v52  ;;  %1285 = vst.sshfl [vmem:[#allocation7 + $0x6] sm:$0x1 pattern:$0x73625140] %v1020_v47 }
 0x272   :  { %v518_v59 = vcombine.high %v516_v50, %v516_v50  ;;  %v532_v60 = vrot.slane %v516_v50, %v1616_v52  ;;  %v539_v61 = vrot.slane %v517_v51, %v1616_v52  ;;  %v547_v62 = vcombine.high %v525_v53, %v525_v53  ;;  %1258 = vst.sshfl [vmem:[#allocation7 + $0xa] sm:$0x1 pattern:$0x73625140] %v517_v51 }
 0x273   :  { %1259 = vst.sshfl [vmem:[#allocation7 + $0x22] sm:$0x1 pattern:$0x73625140] %v516_v50  ;;  %v1029_v63 = vcombine.high %v1027_v54, %v1027_v54  ;;  %v1043_v0 = vrot.slane %v1027_v54, %v1616_v52  ;;  %v1050_v1 = vrot.slane %v1028_v57, %v1616_v52  ;;  %v1058_v2 = vcombine.high %v1036_v58, %v1036_v58 }
 0x274   :  { %1287 = vst.sshfl [vmem:[#allocation7 + $0x26] sm:$0x1 pattern:$0x73625140] %v1027_v54  ;;  %v546_v3 = vrot.slane %v518_v59, %v1616_v52  ;;  %v548_v4 = vcombine.high %v532_v60, %v532_v60  ;;  %v549_v5 = vcombine.high %v539_v61, %v539_v61  ;;  %561 = vst [vmem:[#allocation7 + $0x12] sm:$0x1] %v547_v62 }
 0x275   :  { %1286 = vst.sshfl [vmem:[#allocation7 + $0xe] sm:$0x1 pattern:$0x73625140] %v1028_v57  ;;  %v1057_v6 = vrot.slane %v1029_v63, %v1616_v52  ;;  %v1059_v7 = vcombine.high %v1043_v0, %v1043_v0  ;;  %v1060_v8 = vcombine.high %v1050_v1, %v1050_v1  ;;  %1072 = vst [vmem:[#allocation7 + $0x16] sm:$0x1] %v1058_v2 }
 0x276   :  { %1260 = vst.sshfl [vmem:[#allocation7 + $0x2a] sm:$0x1 pattern:$0x73625140] %v518_v59  ;;  %v623_v9 = vpop.f32.mrb[12].mxu1  ;;  %v550_v10 = vcombine.high %v546_v3, %v546_v3 }
 0x277   :  { %1288 = vst.sshfl [vmem:[#allocation7 + $0x2e] sm:$0x1 pattern:$0x73625140] %v1029_v63  ;;  %562 = vst [vmem:[#allocation7 + $0x1a] sm:$0x1] %v549_v5  ;;  %v630_v11 = vcombine.high %v623_v9, %v623_v9  ;;  %v637_v12 = vrot.slane %v623_v9, %v1616_v52  ;;  %v1061_v14 = vcombine.high %v1057_v6, %v1057_v6 }
 0x278   :  { %565 = vst [vmem:[#allocation7 + $0x32] sm:$0x1] %v548_v4  ;;  %v1350_v13 = vpop.f32.mrb[13].mxu1  ;;  %1073 = vst [vmem:[#allocation7 + $0x1e] sm:$0x1] %v1060_v8 }
 0x279   :  { %1076 = vst [vmem:[#allocation7 + $0x36] sm:$0x1] %v1059_v7  ;;  %v626_v15 = vpop.f32.mrb[14].mxu1  ;;  %566 = vst [vmem:[#allocation7 + $0x3a] sm:$0x1] %v550_v10  ;;  %v644_v16 = vrot.slane %v630_v11, %v1616_v52  ;;  %v645_v17 = vcombine.high %v637_v12, %v637_v12  ;;  %v653_v18 = vrot.slane %v637_v12, %v1616_v52 }
 0x27a   :  { %1264 = vst.sshfl [vmem:[#allocation7 + $0x3] sm:$0x1 pattern:$0x73625140] %v637_v12  ;;  %v1351_v19 = vpop.f32.mrb[15].mxu1 }
 0x27b   :  { %1077 = vst [vmem:[#allocation7 + $0x3e] sm:$0x1] %v1061_v14  ;;  %v646_v20 = vcombine.high %v644_v16, %v644_v16  ;;  %v660_v21 = vrot.slane %v644_v16, %v1616_v52  ;;  %v667_v22 = vrot.slane %v645_v17, %v1616_v52  ;;  %v675_v23 = vcombine.high %v653_v18, %v653_v18 }
 0x27c   :  { %1265 = vst.sshfl [vmem:[#allocation7 + $0xb] sm:$0x1 pattern:$0x73625140] %v645_v17 }
 0x27d   :  { %1266 = vst.sshfl [vmem:[#allocation7 + $0x23] sm:$0x1 pattern:$0x73625140] %v644_v16  ;;  %v674_v24 = vrot.slane %v646_v20, %v1616_v52  ;;  %v676_v25 = vcombine.high %v660_v21, %v660_v21  ;;  %v677_v26 = vcombine.high %v667_v22, %v667_v22  ;;  %689 = vst [vmem:[#allocation7 + $0x13] sm:$0x1] %v675_v23 }
 0x27e   :  { %1267 = vst.sshfl [vmem:[#allocation7 + $0x2b] sm:$0x1 pattern:$0x73625140] %v646_v20  ;;  %v878_v27 = vpop.f32.mrb[16].mxu1 }
 0x27f   :  { %v678_v28 = vcombine.high %v674_v24, %v674_v24  ;;  %690 = vst [vmem:[#allocation7 + $0x1b] sm:$0x1] %v677_v26  ;;  %693 = vst [vmem:[#allocation7 + $0x33] sm:$0x1] %v676_v25  ;;  %v885_v29 = vcombine.high %v878_v27, %v878_v27  ;;  %v892_v30 = vrot.slane %v878_v27, %v1616_v52  ;;  %v1366_v31 = vpop.f32.mrb[17].mxu1 }
 0x280   :  { %v881_v32 = vpop.f32.mrb[18].mxu1 }
 0x281   :  { %694 = vst [vmem:[#allocation7 + $0x3b] sm:$0x1] %v678_v28  ;;  %v899_v33 = vrot.slane %v885_v29, %v1616_v52  ;;  %v900_v34 = vcombine.high %v892_v30, %v892_v30  ;;  %v908_v35 = vrot.slane %v892_v30, %v1616_v52  ;;  %1278 = vst.sshfl [vmem:[#allocation7 + $0x5] sm:$0x1 pattern:$0x73625140] %v892_v30 }
 0x282   :  { %v1367_v36 = vpop.f32.mrb[19].mxu1 }
 0x283   :  { %v901_v37 = vcombine.high %v899_v33, %v899_v33  ;;  %v915_v38 = vrot.slane %v899_v33, %v1616_v52  ;;  %v922_v39 = vrot.slane %v900_v34, %v1616_v52  ;;  %v930_v40 = vcombine.high %v908_v35, %v908_v35  ;;  %1279 = vst.sshfl [vmem:[#allocation7 + $0xd] sm:$0x1 pattern:$0x73625140] %v900_v34 }
 0x284   :  { %1280 = vst.sshfl [vmem:[#allocation7 + $0x25] sm:$0x1 pattern:$0x73625140] %v899_v33 }
 0x285   :  { %v929_v41 = vrot.slane %v901_v37, %v1616_v52  ;;  %v931_v42 = vcombine.high %v915_v38, %v915_v38  ;;  %v932_v43 = vcombine.high %v922_v39, %v922_v39  ;;  %944 = vst [vmem:[#allocation7 + $0x15] sm:$0x1] %v930_v40  ;;  %1281 = vst.sshfl [vmem:[#allocation7 + $0x2d] sm:$0x1 pattern:$0x73625140] %v901_v37 }
 0x286   :  { %v1134_v44 = vpop.f32.mrb[20].mxu1 }
 0x287   :  { %v933_v45 = vcombine.high %v929_v41, %v929_v41  ;;  %945 = vst [vmem:[#allocation7 + $0x1d] sm:$0x1] %v932_v43  ;;  %948 = vst [vmem:[#allocation7 + $0x35] sm:$0x1] %v931_v42  ;;  %v1141_v46 = vcombine.high %v1134_v44, %v1134_v44  ;;  %v1148_v47 = vrot.slane %v1134_v44, %v1616_v52  ;;  %v1382_v48 = vpop.f32.mrb[21].mxu1 }
 0x288   :  { %v1137_v49 = vpop.f32.mrb[22].mxu1 }
 0x289   :  { %949 = vst [vmem:[#allocation7 + $0x3d] sm:$0x1] %v933_v45  ;;  %v1155_v50 = vrot.slane %v1141_v46, %v1616_v52  ;;  %v1156_v51 = vcombine.high %v1148_v47, %v1148_v47  ;;  %v1164_v53 = vrot.slane %v1148_v47, %v1616_v52  ;;  %1292 = vst.sshfl [vmem:[#allocation7 + $0x7] sm:$0x1 pattern:$0x73625140] %v1148_v47 }
 0x28a   :  { %v1383_v54 = vpop.f32.mrb[23].mxu1 }
 0x28b   :  { %v1157_v55 = vcombine.high %v1155_v50, %v1155_v50  ;;  %v1171_v56 = vrot.slane %v1155_v50, %v1616_v52  ;;  %v1178_v57 = vrot.slane %v1156_v51, %v1616_v52  ;;  %v1186_v58 = vcombine.high %v1164_v53, %v1164_v53  ;;  %1293 = vst.sshfl [vmem:[#allocation7 + $0xf] sm:$0x1 pattern:$0x73625140] %v1156_v51 }
 0x28c   :  { %1294 = vst.sshfl [vmem:[#allocation7 + $0x27] sm:$0x1 pattern:$0x73625140] %v1155_v50 }
 0x28d   :  { %v1185_v59 = vrot.slane %v1157_v55, %v1616_v52  ;;  %v1187_v60 = vcombine.high %v1171_v56, %v1171_v56  ;;  %v1188_v61 = vcombine.high %v1178_v57, %v1178_v57  ;;  %1200 = vst [vmem:[#allocation7 + $0x17] sm:$0x1] %v1186_v58  ;;  %1295 = vst.sshfl [vmem:[#allocation7 + $0x2f] sm:$0x1 pattern:$0x73625140] %v1157_v55 }
 0x28f   :  { %v1189_v62 = vcombine.high %v1185_v59, %v1185_v59  ;;  %1201 = vst [vmem:[#allocation7 + $0x1f] sm:$0x1] %v1188_v61  ;;  %1204 = vst [vmem:[#allocation7 + $0x37] sm:$0x1] %v1187_v60 }
 0x291   :  { %1205 = vst [vmem:[#allocation7 + $0x3f] sm:$0x1] %v1189_v62 }
 0x292   :  { %1492 = shalt.err (!%p1489_p6)
}
 0x293   :  { %s1493_s19 = scalar_lea.hbm %s1684_s3, 1024 }
 0x294   :  { %p1494_p7 = scmp.ne.s32.totalorder %s1684_s3, %s1493_s19  ;;  %p1497_p8 = scmp.lt.u32.totalorder %s1493_s19, %s1684_s3 }
 0x296   :  { %p1499_p9 = pnand %p1497_p8, %p1494_p7 }
 0x298   :  { %1502 = shalt.err (!%p1499_p9)
}
 0x299   :  { %1217 = dma.vmem_to_hbm [thread:$0]  %s1212_s15, 1024, %s1684_s3, [#allocation4], %s1510_s22, %s1510_s22, %s1511_s23  }
 0x29a   :  { %1507 = dma.done.wait [#allocation4], 1024  }
 0x29b   :  { %1508 = vsyncadd [#allocation4], 4294966272 }
 0x29c   :  { %1221 = vsyncpa [#allocation3], 1 }
 0x29d   :  { %1222 = vsyncpa [#allocation6], 1 }
 0x29e   :  { %1223 = vsyncpa [#allocation4], 1 }

</bundles_post_ra>
